<compile_context>
chip_gen: v7x
topology: tpu7x:2x2x1
jax: 0.10.0
libtpu: 0.0.40
codegen_flags: <defaults>
</compile_context>

<pallas_src>
import math

import jax
import jax.numpy as jnp
from jax.experimental import pallas as pl
from jax.experimental.pallas import tpu as pltpu

F32 = jnp.float32
BF16 = jnp.bfloat16
LANE = 128

_VMEM = pl.BlockSpec(memory_space=pltpu.MemorySpace.VMEM)


def _ceil_to(x, m=LANE):
  return ((x + m - 1) // m) * m


def _tile(n, cap=512):
  for c in (cap, 256, 128):
    if c <= n and n % c == 0:
      return c
  return n


def _pad2(x, r, c):
  return jnp.pad(x, ((0, r - x.shape[0]), (0, c - x.shape[1])))


def _pad_last2(x, r, c):
  return jnp.pad(x, ((0, 0), (0, r - x.shape[1]), (0, c - x.shape[2])))


def _isz(dt):
  return 2 if dt == BF16 else 4


def _cparams(sem, blocks, scratch_bytes=0):
  """CompilerParams with vmem_limit_bytes sized from the block footprint."""
  need = scratch_bytes
  for shp, dt in blocks:
    need += 2 * math.prod(shp) * _isz(dt)     # double-buffered blocks
  lim = int(min(max(2 * need, 16 * 2 ** 20), 64 * 2 ** 20))
  return pltpu.CompilerParams(dimension_semantics=sem, vmem_limit_bytes=lim)


# ---------------------------------------------------------------------------
# Kernels
# ---------------------------------------------------------------------------

def _mask_kernel(m_ref, a_ref, o_ref):
  # Elementwise mask*adj; inputs/outputs bf16 (binary -> exact).
  o_ref[...] = m_ref[...] * a_ref[...]


def pallas_mask_stack(masks_bf, adjs_bf):
  r, na, nb = adjs_bf.shape
  tm = _tile(na)
  spec = pl.BlockSpec((1, tm, nb), lambda ri, i: (ri, i, 0))
  return pl.pallas_call(
      _mask_kernel,
      grid=(r, na // tm),
      in_specs=[spec, spec],
      out_specs=spec,
      out_shape=jax.ShapeDtypeStruct(adjs_bf.shape, BF16),
      compiler_params=_cparams(("parallel", "parallel"),
                               [((1, tm, nb), BF16)] * 3),
  )(masks_bf, adjs_bf)


def _xw_kernel(x_ref, w_ref, o_ref):
  o_ref[...] = jnp.dot(x_ref[...], w_ref[...],
                       preferred_element_type=F32).astype(o_ref.dtype)


def stage1_xw(x, wcat):
  """X_s @ [W_self | W_rel_1 | ...] -- wide-N matmul, tiled over rows/cols."""
  n, din = x.shape
  cols = wcat.shape[1]
  tm, tn = _tile(n), _tile(cols)
  return pl.pallas_call(
      _xw_kernel,
      grid=(n // tm, cols // tn),
      in_specs=[pl.BlockSpec((tm, din), lambda i, j: (i, 0)),
                pl.BlockSpec((din, tn), lambda i, j: (0, j))],
      out_specs=pl.BlockSpec((tm, tn), lambda i, j: (i, j)),
      out_shape=jax.ShapeDtypeStruct((n, cols), BF16),
      compiler_params=_cparams(("parallel", "parallel"),
                               [((tm, din), BF16), ((din, tn), BF16),
                                ((tm, tn), BF16)]),
  )(x, wcat)


def _make_prop_kernel(apply_relu):
  """A_cat tile @ XW_cat tile, accumulated in f32 scratch; ReLU fused."""
  def kernel(a_ref, xw_ref, self_ref, o_ref, acc_ref):
    k = pl.program_id(1)

    @pl.when(k == 0)
    def _():
      acc_ref[...] = jnp.zeros_like(acc_ref)

    acc_ref[...] += jnp.dot(a_ref[...], xw_ref[...],
                            preferred_element_type=F32)

    @pl.when(k == pl.num_programs(1) - 1)
    def _():
      r = acc_ref[...] + self_ref[...].astype(F32)
      if apply_relu:
        r = jnp.maximum(r, 0.0)              # fused DictReLU epilogue
      o_ref[...] = r.astype(o_ref.dtype)
  return kernel


def stage2_prop(a_cat, xw_cat, y_self, dout_p, apply_relu, out_dtype):
  n, kdim = a_cat.shape
  tm, tk = _tile(n), _tile(kdim)
  return pl.pallas_call(
      _make_prop_kernel(apply_relu),
      grid=(n // tm, kdim // tk),
      in_specs=[pl.BlockSpec((tm, tk), lambda i, k: (i, k)),
                pl.BlockSpec((tk, dout_p), lambda i, k: (k, 0)),
                # self contribution = first column block of Y_t (kept resident)
                pl.BlockSpec((tm, dout_p), lambda i, k: (i, 0))],
      out_specs=pl.BlockSpec((tm, dout_p), lambda i, k: (i, 0)),
      out_shape=jax.ShapeDtypeStruct((n, dout_p), out_dtype),
      scratch_shapes=[pltpu.VMEM((tm, dout_p), F32)],
      compiler_params=_cparams(
          ("parallel", "arbitrary"),
          [((tm, tk), BF16), ((tk, dout_p), BF16), ((tm, dout_p), BF16),
           ((tm, dout_p), out_dtype)],
          scratch_bytes=tm * dout_p * 4),
  )(a_cat, xw_cat, y_self)


def _make_self_only_kernel(apply_relu):
  def kernel(y_ref, o_ref):
    v = y_ref[...].astype(F32)
    if apply_relu:
      v = jnp.maximum(v, 0.0)
    o_ref[...] = v.astype(o_ref.dtype)
  return kernel


def self_only(y, dout_p, apply_relu, out_dtype):
  # Fallback for a node type with no incident edges (not hit in this config).
  n = y.shape[0]
  tm = _tile(n)
  return pl.pallas_call(
      _make_self_only_kernel(apply_relu),
      grid=(n // tm,),
      in_specs=[pl.BlockSpec((tm, dout_p), lambda i: (i, 0))],
      out_specs=pl.BlockSpec((tm, dout_p), lambda i: (i, 0)),
      out_shape=jax.ShapeDtypeStruct((n, dout_p), out_dtype),
      compiler_params=_cparams(("parallel",),
                               [((tm, dout_p), BF16), ((tm, dout_p), out_dtype)]),
  )(y)


def _sigmoid(x):
  # 1/(1+exp(-x)) with the reciprocal routed to the EUP slot; min() guards the
  # tiny approx overshoot so outputs stay in [0, 1].
  return jnp.minimum(pl.reciprocal(1.0 + jnp.exp(-x), approx=True), 1.0)


def _make_inner_kernel(na, nb):
  def kernel(z0_ref, z1t_ref, o_ref):
    z0 = z0_ref[...].astype(BF16)
    s = jnp.dot(z0, z1t_ref[...], preferred_element_type=F32)
    o_ref[...] = _sigmoid(s[:na, :nb]).astype(o_ref.dtype)
  return kernel


def _make_distmult_kernel(num, na, nb):
  def kernel(z0_ref, z1t_ref, diag_ref, o_ref):
    z0 = z0_ref[...]                 # f32, hoisted out of the relation loop
    z1t = z1t_ref[...]               # bf16, hoisted
    diags = diag_ref[...]            # (num, d_p) f32
    for i in range(num):
      z0s = (z0 * diags[i:i + 1, :]).astype(BF16)   # diag(R) as a column scale
      s = jnp.dot(z0s, z1t, preferred_element_type=F32)
      o_ref[i] = _sigmoid(s[:na, :nb]).astype(o_ref.dtype)
  return kernel


def _make_bilinear_kernel(num, d_p, na, nb):
  def kernel(z0_ref, z1t_ref, rcat_ref, o_ref):
    z0 = z0_ref[...].astype(BF16)
    z1t = z1t_ref[...]
    # Batched first matmul: N = num*d_p output lanes fills the 256-wide MXU.
    t = jnp.dot(z0, rcat_ref[...], preferred_element_type=F32)
    for i in range(num):
      ti = t[:, i * d_p:(i + 1) * d_p].astype(BF16)
      s = jnp.dot(ti, z1t, preferred_element_type=F32)
      o_ref[i] = _sigmoid(s[:na, :nb]).astype(o_ref.dtype)
  return kernel


def _make_dedicom_kernel(num, na, nb):
  def kernel(z0_ref, z1t_ref, rg_ref, loc_ref, o_ref):
    z0 = z0_ref[...]                   # f32, hoisted
    z1t = z1t_ref[...]                 # bf16, hoisted
    rg = rg_ref[...].astype(F32)       # shared R, hoisted
    locs = loc_ref[...]                # (num, d_p) f32 local diagonals
    for i in range(num):
      d = locs[i:i + 1, :]
      z0s = (z0 * d).astype(BF16)      # z0 @ diag(d)   (VPU column scale)
      rgd = (rg * d).astype(BF16)      # R  @ diag(d)   (VPU column scale)
      t = jnp.dot(z0s, rgd, preferred_element_type=F32).astype(BF16)
      s = jnp.dot(t, z1t, preferred_element_type=F32)
      o_ref[i] = _sigmoid(s[:na, :nb]).astype(o_ref.dtype)
  return kernel


# ---------------------------------------------------------------------------
# Static plan of the heterogeneous propagation structure
# ---------------------------------------------------------------------------

def build_plan(node_types, adj_keys):
  """stage1_cols[s]: ordered weight terms multiplied against X_s (the 'self'
  term is always column block 0, so stage 2 reads it as Y_s[:, :dout_p]).
  stage2_terms[t]: ordered propagation terms whose adjacency columns form
  A_cat_t.  col_of[term]: column-block index of that term inside Y_src."""
  stage1_cols = {s: [("self", None, None, s)] for s in node_types}
  stage2_terms = {t: [] for t in node_types}
  for (a, b), nrel in adj_keys.items():
    for r in range(nrel):
      term_f = ("fwd", (a, b), r, b)          # A @ X_b @ W_fwd  -> target a
      stage1_cols[b].append(term_f)
      stage2_terms[a].append(term_f)
      if a != b:
        term_b = ("bwd", (a, b), r, a)        # A^T @ X_a @ W_bwd -> target b
        stage1_cols[a].append(term_b)
        stage2_terms[b].append(term_b)
  col_of = {}
  for s, terms in stage1_cols.items():
    for j, term in enumerate(terms):
      col_of[term] = j
  return stage1_cols, stage2_terms, col_of


# ---------------------------------------------------------------------------
# Parameters
# ---------------------------------------------------------------------------

def init_params(key, in_dim, out_dims, node_types, adj_keys, edge_decoder):
  """Deterministic logical-size parameter init (synthetic; no checkpoint)."""
  params = {"encoder": [], "decoder": {}}
  dims = [in_dim] + list(out_dims)

  def nrm(k, shape, scale=0.1):
    return scale * jax.random.normal(k, shape, dtype=F32)

  for l in range(len(out_dims)):
    din, dout = dims[l], dims[l + 1]
    layer = {"self": {}, "fwd": {}, "bwd": {}}
    for t in node_types:
      key, sk = jax.random.split(key)
      layer["self"][t] = nrm(sk, (din, dout))
    for (a, b), nrel in adj_keys.items():
      for r in range(nrel):
        key, sk = jax.random.split(key)
        layer["fwd"][((a, b), r)] = nrm(sk, (din, dout))
        if a != b:
          key, sk = jax.random.split(key)
          layer["bwd"][((a, b), r)] = nrm(sk, (din, dout))
    params["encoder"].append(layer)

  d = out_dims[-1]
  for nodes, (dec, num) in edge_decoder.items():
    p = {"type": dec, "num_types": num}
    if dec == "innerproduct":
      pass
    elif dec == "distmult":
      vs = []
      for _ in range(num):
        key, sk = jax.random.split(key)
        vs.append(nrm(sk, (d,)))
      p["diag"] = vs
    elif dec in ("bilinear", "symbilinear"):
      rs = []
      for _ in range(num):
        key, sk = jax.random.split(key)
        rmat = nrm(sk, (d, d))
        if dec == "symbilinear":
          rmat = 0.5 * (rmat + rmat.T)
        rs.append(rmat)
      p["R"] = rs
    elif dec in ("dedicom", "symdedicom"):
      key, sk = jax.random.split(key)
      rmat = nrm(sk, (d, d))
      if dec == "symdedicom":
        rmat = 0.5 * (rmat + rmat.T)
      ds_ = []
      for _ in range(num):
        key, sk = jax.random.split(key)
        ds_.append(nrm(sk, (d,)))
      p["global"] = rmat
      p["local"] = ds_
    else:
      # TODO(synk): MLP / linear decoder variants not in this synthetic config.
      raise ValueError("Unknown decoder type")
    params["decoder"][nodes] = p
  return params


def pad_params(params, in_dim, out_dims, stage1_cols):
  """Zero-pad to lane-dense dims, bf16 MXU operands, pre-concatenated weights."""
  dims = [in_dim] + list(out_dims)
  enc = []
  for l, layer in enumerate(params["encoder"]):
    din_p, dout_p = _ceil_to(dims[l]), _ceil_to(dims[l + 1])
    wcat = {}
    for s, terms in stage1_cols.items():
      cols = []
      for kind, keyab, r, _src in terms:
        if kind == "self":
          w = layer["self"][s]
        elif kind == "fwd":
          w = layer["fwd"][(keyab, r)]
        else:
          w = layer["bwd"][(keyab, r)]
        cols.append(_pad2(w, din_p, dout_p))
      wcat[s] = jnp.concatenate(cols, axis=1).astype(BF16)
    enc.append({"wcat": wcat, "din_p": din_p, "dout_p": dout_p})

  d = out_dims[-1]
  d_p = _ceil_to(d)
  dec = {}
  for nodes, p in params["decoder"].items():
    q = {"type": p["type"], "num_types": p["num_types"]}
    if p["type"] == "distmult":
      q["diag"] = jnp.stack([jnp.pad(v, (0, d_p - d)) for v in p["diag"]])
    elif p["type"] in ("bilinear", "symbilinear"):
      q["Rcat"] = jnp.concatenate([_pad2(r, d_p, d_p) for r in p["R"]],
                                  axis=1).astype(BF16)
    elif p["type"] in ("dedicom", "symdedicom"):
      q["global"] = _pad2(p["global"], d_p, d_p).astype(BF16)
      q["local"] = jnp.stack([jnp.pad(v, (0, d_p - d)) for v in p["local"]])
    dec[nodes] = q
  return {"encoder": enc, "decoder": dec}


# ---------------------------------------------------------------------------
# Forward
# ---------------------------------------------------------------------------

def build_a_cat(masked, stage2_terms):
  # One-time per forward (layout plumbing, amortized over both encoder layers):
  # pre-transposed backward adjacency + per-target column concatenation.
  masked_t = {k: jnp.swapaxes(v, 1, 2) for k, v in masked.items()
              if k[0] != k[1]}
  a_cat = {}
  for t, terms in stage2_terms.items():
    if not terms:
      continue
    blocks = []
    for kind, keyab, r, _src in terms:
      blocks.append(masked[keyab][r] if kind == "fwd" else masked_t[keyab][r])
    a_cat[t] = jnp.concatenate(blocks, axis=1)
  return a_cat


def encode(enc_params, fea_pad, a_cat, stage2_terms, col_of):
  n_layers = len(enc_params)
  x = fea_pad
  for l, layer in enumerate(enc_params):
    last = (l + 1 == n_layers)
    dout_p = layer["dout_p"]
    out_dtype = F32 if last else BF16
    # Stage 1: one wide X_s @ Wcat_s per source type.
    y = {s: stage1_xw(x[s], layer["wcat"][s]) for s in x}
    # Stage 2: per target type, row-tiled / K-reduced A_cat @ XW_cat (+ self).
    new_x = {}
    for t in x:
      terms = stage2_terms[t]
      if not terms:
        new_x[t] = self_only(y[t], dout_p, apply_relu=not last,
                             out_dtype=out_dtype)
        continue
      slices = []
      for term in terms:
        src, j = term[3], col_of[term]
        slices.append(y[src][:, j * dout_p:(j + 1) * dout_p])
      xw_cat = jnp.concatenate(slices, axis=0)     # (K_t, dout_p) bf16
      new_x[t] = stage2_prop(a_cat[t], xw_cat, y[t], dout_p,
                             apply_relu=not last, out_dtype=out_dtype)
    x = new_x
    # DictDropout(p=0.5) is identity in eval mode.
  return x


def decode(dec_params, z_pad, node_counts):
  # bf16-transposed z built once per node type and shared by all decoder keys.
  z_t_bf = {t: z_pad[t].astype(BF16).T for t in z_pad}
  adj_recon = {}
  for nodes, dec in dec_params.items():
    a, b = nodes
    z0, z1t = z_pad[a], z_t_bf[b]
    na, nb = node_counts[a], node_counts[b]
    num, kind = dec["num_types"], dec["type"]
    d_p = z0.shape[1]
    if kind == "innerproduct":
      out = pl.pallas_call(
          _make_inner_kernel(na, nb),
          in_specs=[_VMEM, _VMEM], out_specs=_VMEM,
          out_shape=jax.ShapeDtypeStruct((na, nb), BF16),
          compiler_params=_cparams(None, [(z0.shape, F32), (z1t.shape, BF16),
                                          ((na, nb), BF16)]),
      )(z0, z1t)
      mats = [out for _ in range(num)]          # identical across types (eval)
    elif kind == "distmult":
      out = pl.pallas_call(
          _make_distmult_kernel(num, na, nb),
          in_specs=[_VMEM] * 3, out_specs=_VMEM,
          out_shape=jax.ShapeDtypeStruct((num, na, nb), BF16),
          compiler_params=_cparams(None, [(z0.shape, F32), (z1t.shape, BF16),
                                          ((num, d_p), F32),
                                          ((num, na, nb), BF16)]),
      )(z0, z1t, dec["diag"])
      mats = [out[i] for i in range(num)]
    elif kind in ("bilinear", "symbilinear"):
      out = pl.pallas_call(
          _make_bilinear_kernel(num, d_p, na, nb),
          in_specs=[_VMEM] * 3, out_specs=_VMEM,
          out_shape=jax.ShapeDtypeStruct((num, na, nb), BF16),
          compiler_params=_cparams(None, [(z0.shape, F32), (z1t.shape, BF16),
                                          ((d_p, num * d_p), BF16),
                                          ((num, na, nb), BF16)]),
      )(z0, z1t, dec["Rcat"])
      mats = [out[i] for i in range(num)]
    elif kind in ("dedicom", "symdedicom"):
      out = pl.pallas_call(
          _make_dedicom_kernel(num, na, nb),
          in_specs=[_VMEM] * 4, out_specs=_VMEM,
          out_shape=jax.ShapeDtypeStruct((num, na, nb), BF16),
          compiler_params=_cparams(None, [(z0.shape, F32), (z1t.shape, BF16),
                                          ((d_p, d_p), BF16), ((num, d_p), F32),
                                          ((num, na, nb), BF16)]),
      )(z0, z1t, dec["global"], dec["local"])
      mats = [out[i] for i in range(num)]
    else:
      raise ValueError("Unknown decoder type")
    adj_recon[nodes] = mats
  return adj_recon


def medgae_forward(params_pad, fea_pad, adj_stacked, mask_stacked,
                   stage2_terms, col_of, node_counts, latent_dim):
  # 1) mask * adj (tiled elementwise kernel, bf16 in / bf16 out).
  masked = {}
  for key, adj in adj_stacked.items():
    masked[key] = (pallas_mask_stack(mask_stacked[key], adj)
                   if key in mask_stacked else adj)
  # 2) one-time adjacency layout (A^T + per-target concat), reused by layers.
  a_cat = build_a_cat(masked, stage2_terms)
  # 3) encode (fused 2-stage HGCN layers), 4) decode (fused per edge key).
  z_pad = encode(params_pad["encoder"], fea_pad, a_cat, stage2_terms, col_of)
  adj_recon = decode(params_pad["decoder"], z_pad, node_counts)
  z = {t: z_pad[t][:node_counts[t], :latent_dim] for t in z_pad}
  return adj_recon, z


# ---------------------------------------------------------------------------
# Example run
# ---------------------------------------------------------------------------

if __name__ == "__main__":
  key = jax.random.PRNGKey(0)

  # small synthetic heterogeneous graph: node type 0 (32 nodes), type 1 (48)
  N = {0: 32, 1: 48}
  in_dim = 16
  out_dims = [32, 16]
  node_types = [0, 1]
  adj_keys = {(0, 0): 1, (0, 1): 2, (1, 1): 1}        # key -> #relations
  edge_decoder = {
      (0, 0): ("innerproduct", 1),
      (0, 1): ("bilinear", 2),
      (1, 0): ("distmult", 1),
      (1, 1): ("dedicom", 2),
  }

  stage1_cols, stage2_terms, col_of = build_plan(node_types, adj_keys)

  # logical features
  fea_mats = {}
  for t in node_types:
    key, sk = jax.random.split(key)
    fea_mats[t] = jax.random.normal(sk, (N[t], in_dim), dtype=F32)

  # logical adjacency matrices + masks (dense binary)
  adj_mats, adj_masks = {}, {}
  for (a, b), nrel in adj_keys.items():
    mats, msks = [], []
    for _ in range(nrel):
      key, k1, k2 = jax.random.split(key, 3)
      mats.append(jax.random.bernoulli(k1, 0.2, (N[a], N[b])).astype(F32))
      msks.append(jax.random.bernoulli(k2, 0.8, (N[a], N[b])).astype(F32))
    adj_mats[(a, b)] = mats
    adj_masks[(a, b)] = msks

  key, pk = jax.random.split(key)
  params = init_params(pk, in_dim, out_dims, node_types, adj_keys, edge_decoder)
  params_pad = pad_params(params, in_dim, out_dims, stage1_cols)

  # lane-dense padding of inputs; adjacency/masks are binary -> exact bf16
  Np = {t: _ceil_to(N[t]) for t in node_types}
  din_p = _ceil_to(in_dim)
  fea_pad = {t: _pad2(fea_mats[t], Np[t], din_p).astype(BF16)
             for t in node_types}
  adj_stacked, mask_stacked = {}, {}
  for (a, b), mats in adj_mats.items():
    adj_stacked[(a, b)] = _pad_last2(jnp.stack(mats), Np[a], Np[b]).astype(BF16)
  for (a, b), msks in adj_masks.items():
    mask_stacked[(a, b)] = _pad_last2(jnp.stack(msks), Np[a], Np[b]).astype(BF16)

  adj_recon, z = medgae_forward(params_pad, fea_pad, adj_stacked, mask_stacked,
                                stage2_terms, col_of,
                                node_counts=N, latent_dim=out_dims[-1])
  jax.block_until_ready((adj_recon, z))

  # light sanity checks
  assert z[0].shape == (N[0], out_dims[-1])
  assert z[1].shape == (N[1], out_dims[-1])
  assert adj_recon[(0, 1)][0].shape == (N[0], N[1])
  assert adj_recon[(1, 0)][0].shape == (N[1], N[0])
  for nodes, mats in adj_recon.items():
    assert len(mats) == edge_decoder[nodes][1]
    for m in mats:
      mf = m.astype(F32)
      assert bool(jnp.all(jnp.isfinite(mf)))
      assert bool(jnp.all((mf >= 0.0) & (mf <= 1.0)))
  for t in node_types:
    assert bool(jnp.all(jnp.isfinite(z[t])))
  print("KERNEL_OK")
</pallas_src>

<mosaic_0001>
module attributes {stable_mosaic.version = 11 : i64} {
  func.func @_mask_kernel(%arg0: i32, %arg1: i32, %arg2: memref<1x128x128xbf16, #tpu.memory_space<vmem>>, %arg3: memref<1x128x128xbf16, #tpu.memory_space<vmem>>, %arg4: memref<1x128x128xbf16, #tpu.memory_space<vmem>>) attributes {dimension_semantics = [#tpu.dimension_semantics<parallel>, #tpu.dimension_semantics<parallel>], iteration_bounds = array<i64: 1, 1>, scalar_prefetch = 0 : i64, scratch_operands = 0 : i64, tpu.core_type = #tpu.core_type<tc>, window_params = [{transform_indices = @transform_0, window_bounds = array<i64: 1, 128, 128>}, {transform_indices = @transform_1, window_bounds = array<i64: 1, 128, 128>}, {transform_indices = @transform_2, window_bounds = array<i64: 1, 128, 128>}]} {
    %c0 = arith.constant 0 : index
    %c0_0 = arith.constant 0 : index
    %c0_1 = arith.constant 0 : index
    %0 = vector.load %arg2[%c0, %c0_0, %c0_1] : memref<1x128x128xbf16, #tpu.memory_space<vmem>>, vector<1x128x128xbf16>
    %c0_2 = arith.constant 0 : index
    %c0_3 = arith.constant 0 : index
    %c0_4 = arith.constant 0 : index
    %1 = vector.load %arg3[%c0_2, %c0_3, %c0_4] : memref<1x128x128xbf16, #tpu.memory_space<vmem>>, vector<1x128x128xbf16>
    %2 = arith.mulf %0, %1 : vector<1x128x128xbf16>
    %c0_5 = arith.constant 0 : index
    %c0_6 = arith.constant 0 : index
    %c0_7 = arith.constant 0 : index
    %3 = vector.load %arg4[%c0_5, %c0_6, %c0_7] : memref<1x128x128xbf16, #tpu.memory_space<vmem>>, vector<1x128x128xbf16>
    tpu.vector_store %arg4[%c0_5, %c0_6, %c0_7], %2 {strides = array<i32>} : memref<1x128x128xbf16, #tpu.memory_space<vmem>>, vector<1x128x128xbf16>,
    return
  }
  func.func @transform_0(%arg0: i32, %arg1: i32) -> (i32, i32, i32) {
    %c0_i32 = arith.constant 0 : i32
    %c0_i32_0 = arith.constant 0 : i32
    return %arg0, %arg1, %c0_i32 : i32, i32, i32
  }
  func.func @transform_1(%arg0: i32, %arg1: i32) -> (i32, i32, i32) {
    %c0_i32 = arith.constant 0 : i32
    %c0_i32_0 = arith.constant 0 : i32
    return %arg0, %arg1, %c0_i32 : i32, i32, i32
  }
  func.func @transform_2(%arg0: i32, %arg1: i32) -> (i32, i32, i32) {
    %c0_i32 = arith.constant 0 : i32
    %c0_i32_0 = arith.constant 0 : i32
    return %arg0, %arg1, %c0_i32 : i32, i32, i32
  }
}

</mosaic_0001>

<bundles_post_ra>
// kernel: tpu_custom_call.1
= control target key start
LH: loop header
LB: loop body
LE: loop exit
PB: predicated region body
PF: predicated region fallthrough
CT: control target
= control target key end

     0   :  { %7 = vsyncpa [#allocation3], 0  ;;  %s319_s0 = inlined_call_operand.hbm [shape: bf16[1,128,128], index: 0, kind: input, shape index: {}]   ;;  %s320_s1 = inlined_call_operand.hbm [shape: bf16[1,128,128], index: 1, kind: input, shape index: {}]   ;;  %s321_s2 = inlined_call_operand.hbm [shape: bf16[1,128,128], index: 2, kind: output, shape index: {}]  }
   0x1   :  { %8 = vsyncpa [#allocation6], 0 }
   0x2   :  { %9 = vsyncpa [#allocation4], 0  ;;  %s254_s9 = smov [#allocation2]   ;;  %s182_s13 = scalar_lea.hbm %s319_s0, 1024 }
   0x3   :  { %s15_s10 = sshll.u32 %s254_s9, 4  ;;  %p183_p0 = scmp.ne.s32.totalorder %s319_s0, %s182_s13  ;;  %s16_s10 = int_to_ptr.vmem [resolvable:$true] %s15_s10 }
   0x4   :  { %p186_p1 = scmp.lt.u32.totalorder %s182_s13, %s319_s0 }
   0x6   :  { %p188_p2 = pnand %p186_p1, %p183_p0 }
   0x8   :  { %191 = shalt.err (!%p188_p2)
}
   0x9   :  { %s192_s18 = scalar_lea.vmem %s16_s10, 1024  ;;  %p197_p4 = scmp.lt.s32.totalorder %s16_s10, %s16_s10 }
   0xa   :  { %p193_p3 = scmp.ne.s32.totalorder %s16_s10, %s192_s18  ;;  %p198_p5 = scmp.lt.s32.totalorder %s192_s18, %s192_s18 }
   0xc   :  { %p199_p6 = por %p198_p5, %p197_p4 }
   0xe   :  { %p200_p7 = pnand %p199_p6, %p193_p3 }
  0x10   :  { %203 = shalt.err (!%p200_p7)
}
  0x11   :  { %s255_s19 = smov 64   ;;  %s256_s20 = smov 4  }
  0x12   :  { %21 = dma.hbm_to_vmem [thread:$0]  %s319_s0, 1024, %s16_s10, [#allocation3], %s255_s19, %s255_s19, %s256_s20  }
  0x13   :  { %s257_s23 = smov [#allocation5]   ;;  %s204_s27 = scalar_lea.hbm %s320_s1, 1024 }
  0x14   :  { %s27_s24 = sshll.u32 %s257_s23, 4  ;;  %p205_p8 = scmp.ne.s32.totalorder %s320_s1, %s204_s27  ;;  %s28_s24 = int_to_ptr.vmem [resolvable:$true] %s27_s24 }
  0x15   :  { %p208_p9 = scmp.lt.u32.totalorder %s204_s27, %s320_s1 }
  0x17   :  { %p210_p10 = pnand %p208_p9, %p205_p8 }
  0x19   :  { %213 = shalt.err (!%p210_p10)
}
  0x1a   :  { %s214_s4 = scalar_lea.vmem %s28_s24, 1024  ;;  %p219_p12 = scmp.lt.s32.totalorder %s28_s24, %s28_s24 }
  0x1b   :  { %p215_p11 = scmp.ne.s32.totalorder %s28_s24, %s214_s4  ;;  %p220_p13 = scmp.lt.s32.totalorder %s214_s4, %s214_s4 }
  0x1d   :  { %p221_p0 = por %p220_p13, %p219_p12 }
  0x1f   :  { %p222_p1 = pnand %p221_p0, %p215_p11 }
  0x21   :  { %225 = shalt.err (!%p222_p1)
}
  0x22   :  { %33 = dma.hbm_to_vmem [thread:$0]  %s320_s1, 1024, %s28_s24, [#allocation6], %s255_s19, %s255_s19, %s256_s20  }
  0x23   :  { %248 = dma.done.wait [#allocation3], 1024  }
  0x24   :  { %249 = vsyncadd [#allocation3], 4294966272 }
  0x25   :  { %250 = dma.done.wait [#allocation6], 1024  }
  0x26   :  { %251 = vsyncadd [#allocation6], 4294966272  ;;  %v40_v0 = vld [vmem:[#allocation2] sm:$0xf]  ;;  %v41_v1 = vld [vmem:[#allocation2 + $0x4] sm:$0xf] }
  0x27   :  { %v56_v2 = vld [vmem:[#allocation5] sm:$0xf]  ;;  %v57_v3 = vld [vmem:[#allocation5 + $0x4] sm:$0xf]  ;;  %v42_v5 = vld [vmem:[#allocation2 + $0x8] sm:$0xf] }
  0x28   :  { %v72_v4 = vmul.bf16 %v56_v2, %v40_v0  ;;  %v43_v6 = vld [vmem:[#allocation2 + $0xc] sm:$0xf]  ;;  %v73_v7 = vmul.bf16 %v57_v3, %v41_v1  ;;  %v58_v8 = vld [vmem:[#allocation5 + $0x8] sm:$0xf]  ;;  %v44_v10 = vld [vmem:[#allocation2 + $0x10] sm:$0xf] }
  0x29   :  { %v59_v9 = vld [vmem:[#allocation5 + $0xc] sm:$0xf]  ;;  %v74_v11 = vmul.bf16 %v58_v8, %v42_v5  ;;  %v45_v13 = vld [vmem:[#allocation2 + $0x14] sm:$0xf]  ;;  %v60_v14 = vld [vmem:[#allocation5 + $0x10] sm:$0xf] }
  0x2a   :  { %v75_v12 = vmul.bf16 %v59_v9, %v43_v6  ;;  %v61_v15 = vld [vmem:[#allocation5 + $0x14] sm:$0xf]  ;;  %v162_v16 = vcombine.low %v72_v4, %v73_v7  ;;  %v76_v17 = vmul.bf16 %v60_v14, %v44_v10  ;;  %v46_v19 = vld [vmem:[#allocation2 + $0x18] sm:$0xf]  ;;  %v47_v20 = vld [vmem:[#allocation2 + $0x1c] sm:$0xf] }
  0x2b   :  { %v77_v18 = vmul.bf16 %v61_v15, %v45_v13  ;;  %v62_v21 = vld [vmem:[#allocation5 + $0x18] sm:$0xf]  ;;  %v63_v23 = vld [vmem:[#allocation5 + $0x1c] sm:$0xf]  ;;  %v48_v25 = vld [vmem:[#allocation2 + $0x20] sm:$0xf] }
  0x2c   :  { %v163_v22 = vcombine.low %v74_v11, %v75_v12  ;;  %v78_v24 = vmul.bf16 %v62_v21, %v46_v19  ;;  %v49_v26 = vld [vmem:[#allocation2 + $0x24] sm:$0xf]  ;;  %126 = vst [vmem:[#allocation7] sm:$0xff] %v162_v16   ;;  %v79_v28 = vmul.bf16 %v63_v23, %v47_v20  ;;  %v64_v29 = vld [vmem:[#allocation5 + $0x20] sm:$0xf]  ;;  %s258_s1 = smov [#allocation7]  }
  0x2d   :  { %v165_v27 = vcombine.low %v76_v17, %v77_v18  ;;  %v65_v30 = vld [vmem:[#allocation5 + $0x24] sm:$0xf]  ;;  %v50_v31 = vld [vmem:[#allocation2 + $0x28] sm:$0xf]  ;;  %v80_v32 = vmul.bf16 %v64_v29, %v48_v25  ;;  %v51_v34 = vld [vmem:[#allocation2 + $0x2c] sm:$0xf] }
  0x2e   :  { %164 = vst [vmem:[#allocation7 + $0x8] sm:$0xff] %v163_v22   ;;  %v81_v33 = vmul.bf16 %v65_v30, %v49_v26  ;;  %v66_v35 = vld [vmem:[#allocation5 + $0x28] sm:$0xf]  ;;  %v67_v36 = vld [vmem:[#allocation5 + $0x2c] sm:$0xf]  ;;  %v167_v37 = vcombine.low %v78_v24, %v79_v28  ;;  %s109_s6 = sshll.u32 %s258_s1, 4  ;;  %s110_s6 = int_to_ptr.vmem [resolvable:$true] %s109_s6 }
  0x2f   :  { %166 = vst [vmem:[#allocation7 + $0x10] sm:$0xff] %v165_v27   ;;  %v82_v38 = vmul.bf16 %v66_v35, %v50_v31  ;;  %v83_v39 = vmul.bf16 %v67_v36, %v51_v34  ;;  %v52_v40 = vld [vmem:[#allocation2 + $0x30] sm:$0xf]  ;;  %v53_v41 = vld [vmem:[#allocation2 + $0x34] sm:$0xf]  ;;  %s226_s7 = scalar_lea.vmem %s110_s6, 1024  ;;  %p231_p3 = scmp.lt.s32.totalorder %s110_s6, %s110_s6 }
  0x30   :  { %v68_v42 = vld [vmem:[#allocation5 + $0x30] sm:$0xf]  ;;  %v169_v43 = vcombine.low %v80_v32, %v81_v33  ;;  %v69_v44 = vld [vmem:[#allocation5 + $0x34] sm:$0xf]  ;;  %v54_v46 = vld [vmem:[#allocation2 + $0x38] sm:$0xf]  ;;  %p227_p2 = scmp.ne.s32.totalorder %s110_s6, %s226_s7  ;;  %p232_p4 = scmp.lt.s32.totalorder %s226_s7, %s226_s7 }
  0x31   :  { %v84_v45 = vmul.bf16 %v68_v42, %v52_v40  ;;  %v55_v47 = vld [vmem:[#allocation2 + $0x3c] sm:$0xf]  ;;  %168 = vst [vmem:[#allocation7 + $0x18] sm:$0xff] %v167_v37   ;;  %v171_v48 = vcombine.low %v82_v38, %v83_v39  ;;  %v85_v49 = vmul.bf16 %v69_v44, %v53_v41  ;;  %v70_v50 = vld [vmem:[#allocation5 + $0x38] sm:$0xf] }
  0x32   :  { %v71_v51 = vld [vmem:[#allocation5 + $0x3c] sm:$0xf]  ;;  %170 = vst [vmem:[#allocation7 + $0x20] sm:$0xff] %v169_v43   ;;  %v86_v52 = vmul.bf16 %v70_v50, %v54_v46  ;;  %p233_p5 = por %p232_p4, %p231_p3 }
  0x33   :  { %v87_v53 = vmul.bf16 %v71_v51, %v55_v47  ;;  %172 = vst [vmem:[#allocation7 + $0x28] sm:$0xff] %v171_v48   ;;  %v173_v54 = vcombine.low %v84_v45, %v85_v49 }
  0x34   :  { %p234_p6 = pnand %p233_p5, %p227_p2 }
  0x35   :  { %v175_v55 = vcombine.low %v86_v52, %v87_v53  ;;  %174 = vst [vmem:[#allocation7 + $0x30] sm:$0xff] %v173_v54  }
  0x37   :  { %176 = vst [vmem:[#allocation7 + $0x38] sm:$0xff] %v175_v55  }
  0x38   :  { %237 = shalt.err (!%p234_p6)
}
  0x39   :  { %s238_s10 = scalar_lea.hbm %s321_s2, 1024 }
  0x3a   :  { %p239_p7 = scmp.ne.s32.totalorder %s321_s2, %s238_s10  ;;  %p242_p8 = scmp.lt.u32.totalorder %s238_s10, %s321_s2 }
  0x3c   :  { %p244_p9 = pnand %p242_p8, %p239_p7 }
  0x3e   :  { %247 = shalt.err (!%p244_p9)
}
  0x3f   :  { %115 = dma.vmem_to_hbm [thread:$0]  %s110_s6, 1024, %s321_s2, [#allocation4], %s255_s19, %s255_s19, %s256_s20  }
  0x40   :  { %252 = dma.done.wait [#allocation4], 1024  }
  0x41   :  { %253 = vsyncadd [#allocation4], 4294966272 }
  0x42   :  { %119 = vsyncpa [#allocation3], 1 }
  0x43   :  { %120 = vsyncpa [#allocation6], 1 }
  0x44   :  { %121 = vsyncpa [#allocation4], 1 }

</bundles_post_ra>
